<compile_context>
chip_gen: v7x
topology: tpu7x:2x2x1
jax: 0.10.0
libtpu: 0.0.40
codegen_flags: <defaults>
</compile_context>

<pallas_src>
import functools

import jax
import jax.numpy as jnp
from jax.experimental import pallas as pl
from jax.experimental.pallas import tpu as pltpu


def _fusion_kernel(x_ref, wqkv_ref, bqkv_ref, seg_ref, wop_ref, bop_ref,
                   mseg_ref, gamma_ref, beta_ref, out_ref, *, lane_w, eps):
    """One grid step: (tile, P*Din) packed rows -> (tile, P*Hp) output."""
    f32 = jnp.float32
    W = lane_w  # lane-group width = P * Hp (multiple of 128)

    x = x_ref[...].astype(f32)

    # Single fused projection: [q_scaled | dk=(k2-k1) | vm=(v1+v2)/2 | dvh=(v2-v1)/2]
    qkv = jnp.dot(x, wqkv_ref[...], preferred_element_type=f32) + bqkv_ref[...]
    qs = qkv[:, 0 * W:1 * W]
    dk = qkv[:, 1 * W:2 * W]
    vm = qkv[:, 2 * W:3 * W]
    dvh = qkv[:, 3 * W:4 * W]

    # Per-head (s2 - s1)/2 via block-diagonal segment-sum matmul; the
    # 0.5/sqrt(head_dim) scale is already folded into the q weight columns.
    s = jnp.dot(qs * dk, seg_ref[...], preferred_element_type=f32)

    # 2-key softmax in tanh form:
    #   attn = v1 + sigmoid(s2-s1)*(v2-v1) = vm + tanh((s2-s1)/2)*dvh
    # tanh runs on the EUP slot; no divide / reciprocal on the VALU path.
    attn = vm + jnp.tanh(s) * dvh

    # Fused out_proj -> output Linear with LayerNorm mean-centering folded in:
    # d == y - mean(y) directly from one matmul.
    d = jnp.dot(attn, wop_ref[...], preferred_element_type=f32) + bop_ref[...]

    # LayerNorm variance via segment-mean matmul, then affine + ReLU.
    var = jnp.dot(d * d, mseg_ref[...], preferred_element_type=f32)
    yn = d * jax.lax.rsqrt(var + eps) * gamma_ref[...] + beta_ref[...]
    out_ref[...] = jnp.maximum(yn, 0.0).astype(out_ref.dtype)


def multihead_attention_fusion(f_classic, f_graph, params, *, num_heads,
                               max_tile_rows=None):
    f32 = jnp.float32
    N, Dc = f_classic.shape
    _, Dg = f_graph.shape
    H = params["wc"].shape[1]
    assert H % num_heads == 0
    head_dim = H // num_heads
    Din = Dc + Dg

    # ---- Lane-dense packing geometry ----------------------------------------
    # Pad hidden to Hp so the per-row lane width P*Hp is a multiple of 128
    # (unmasked full-width stores), then pack P samples per 128-lane row.
    if H <= 128:
        Hp = 1 << (H - 1).bit_length()        # next pow2 >= H (divides 128)
        P = 128 // Hp
    else:
        Hp = -(-H // 128) * 128
        P = 1
    Wl = P * Hp                               # lane width of one packed row

    # ---- Host-side weight folding (computed once by XLA) --------------------
    wc, wg = params["wc"].astype(f32), params["wg"].astype(f32)
    bc, bg = params["bc"].astype(f32), params["bg"].astype(f32)
    wq, wk, wv, wo, wp = (params[k].astype(f32)
                          for k in ("wq", "wk", "wv", "wo", "wp"))
    bq, bk, bv, bo, bp = (params[k].astype(f32)
                          for k in ("bq", "bk", "bv", "bo", "bp"))

    q_scale = 0.5 / float(head_dim) ** 0.5    # softmax scale + tanh half, folded

    Wq_c = (wc @ wq) * q_scale
    bq_c = (bc @ wq + bq) * q_scale
    Wk_c, Wk_g = wc @ wk, wg @ wk
    bk_c, bk_g = bc @ wk + bk, bg @ wk + bk
    Wv_c, Wv_g = wc @ wv, wg @ wv
    bv_c, bv_g = bc @ wv + bv, bg @ wv + bv

    # Fused per-sample projection to [q_s | dk | vm | dvh], each Hp lanes wide.
    W_single = jnp.zeros((Din, 4 * Hp), f32)
    W_single = W_single.at[:Dc, 0 * Hp:0 * Hp + H].set(Wq_c)
    W_single = W_single.at[:Dc, 1 * Hp:1 * Hp + H].set(-Wk_c)
    W_single = W_single.at[Dc:, 1 * Hp:1 * Hp + H].set(Wk_g)
    W_single = W_single.at[:Dc, 2 * Hp:2 * Hp + H].set(0.5 * Wv_c)
    W_single = W_single.at[Dc:, 2 * Hp:2 * Hp + H].set(0.5 * Wv_g)
    W_single = W_single.at[:Dc, 3 * Hp:3 * Hp + H].set(-0.5 * Wv_c)
    W_single = W_single.at[Dc:, 3 * Hp:3 * Hp + H].set(0.5 * Wv_g)

    b_single = jnp.zeros((1, 4 * Hp), f32)
    b_single = b_single.at[:, 0 * Hp:0 * Hp + H].set(bq_c)
    b_single = b_single.at[:, 1 * Hp:1 * Hp + H].set(bk_g - bk_c)
    b_single = b_single.at[:, 2 * Hp:2 * Hp + H].set(0.5 * (bv_c + bv_g))
    b_single = b_single.at[:, 3 * Hp:3 * Hp + H].set(0.5 * (bv_g - bv_c))

    eyeP = jnp.eye(P, dtype=f32)
    W_pack = jnp.einsum("sp,dgh->sdgph", eyeP,
                        W_single.reshape(Din, 4, Hp)).reshape(P * Din, 4 * Wl)
    b_pack = jnp.tile(b_single.reshape(1, 4, 1, Hp), (1, 1, P, 1)).reshape(1, 4 * Wl)

    # Fused out_proj -> Linear, mean-centering (over the real H lanes) folded in.
    Wop_f = wo @ wp                           # (H, H)
    bop_f = bo @ wp + bp                      # (1, H)
    Wop_pad = jnp.zeros((Hp, Hp), f32).at[:H, :H].set(Wop_f)
    bop_pad = jnp.zeros((1, Hp), f32).at[:, :H].set(bop_f)

    pos_h = jnp.arange(Hp)
    real_h = (pos_h < H).astype(f32)
    mseg_h = (real_h[:, None] * real_h[None, :]) / float(H)   # real-lane mean
    cent_h = jnp.eye(Hp, dtype=f32) - mseg_h
    Wop_c_1 = Wop_pad @ cent_h
    bop_c_1 = bop_pad @ cent_h

    def blockdiag(m):   # (Hp,Hp) -> (Wl,Wl), block-diagonal over packed samples
        return jnp.einsum("sp,ij->sipj", eyeP, m).reshape(Wl, Wl)

    W_op_c = blockdiag(Wop_c_1)
    b_op_c = jnp.tile(bop_c_1, (1, P))
    mseg = blockdiag(mseg_h)

    head_h = pos_h // head_dim
    seg_h = (head_h[:, None] == head_h[None, :]).astype(f32)
    seg = blockdiag(seg_h)

    gamma_pack = jnp.tile(
        jnp.zeros((1, Hp), f32).at[:, :H].set(params["gamma"].astype(f32).reshape(1, H)),
        (1, P))
    beta_pack = jnp.tile(
        jnp.zeros((1, Hp), f32).at[:, :H].set(params["beta"].astype(f32).reshape(1, H)),
        (1, P))

    # ---- Tile / grid selection (generation-aware) ---------------------------
    try:
        vmem_cap = int(pltpu.get_tpu_info().vmem_capacity_bytes)
    except Exception:
        vmem_cap = 64 << 20                   # conservative fallback (v7x per-TC)
    if max_tile_rows is None:
        max_tile_rows = 2048 if vmem_cap >= (100 << 20) else 1024

    Np = -(-N // P)                           # packed rows (pre-padding)
    if Np <= 8:
        tile, grid_n = Np, 1                  # tiny: one full-array grid step
    else:
        # >= 2 grid steps so both v7x TensorCores get work; tile multiple of 8.
        tile = min(max_tile_rows, max(8, ((-(-Np // 2)) + 7) // 8 * 8))
        grid_n = -(-Np // tile)
    Np_pad = grid_n * tile
    N_pad = Np_pad * P

    xi = jnp.concatenate([f_classic.astype(f32), f_graph.astype(f32)], axis=1)
    if N_pad != N:
        xi = jnp.pad(xi, ((0, N_pad - N), (0, 0)))
    x_packed = xi.reshape(Np_pad, P * Din)    # free row-major reinterpretation

    consts = [W_pack, b_pack, seg, W_op_c, b_op_c, mseg, gamma_pack, beta_pack]

    def full_spec(a):
        return pl.BlockSpec(a.shape, lambda i: (0, 0))

    kernel = functools.partial(_fusion_kernel, lane_w=Wl, eps=1e-5)

    # Scoped VMEM: per-step need at tile<=2048 is ~25 MB; leave headroom but
    # stay well under v7x's 64 MiB physical per-TC budget.
    vmem_limit = int(max(32 << 20, min(vmem_cap * 3 // 4, 96 << 20)))

    out_packed = pl.pallas_call(
        kernel,
        out_shape=jax.ShapeDtypeStruct((Np_pad, Wl), f32),
        grid_spec=pltpu.PrefetchScalarGridSpec(
            num_scalar_prefetch=0,
            grid=(grid_n,),
            in_specs=[pl.BlockSpec((tile, P * Din), lambda i: (i, 0))]
                     + [full_spec(a) for a in consts],
            out_specs=pl.BlockSpec((tile, Wl), lambda i: (i, 0)),
        ),
        compiler_params=pltpu.CompilerParams(
            dimension_semantics=("parallel",),
            vmem_limit_bytes=vmem_limit),
    )(x_packed, *consts)

    # (Np_pad, P*Hp) row-major == (Np_pad*P, Hp) row-major: free unpack.
    out = out_packed.reshape(Np_pad * P, Hp)
    if Hp != H:
        out = out[:, :H]
    return out[:N]


def _reference(f_classic, f_graph, p, num_heads):
    """Pure-JAX reference (eval-mode PyTorch semantics), unfused weights."""
    c = f_classic @ p["wc"] + p["bc"][0]
    g = f_graph @ p["wg"] + p["bg"][0]
    q = c @ p["wq"] + p["bq"][0]
    k1 = c @ p["wk"] + p["bk"][0]
    k2 = g @ p["wk"] + p["bk"][0]
    v1 = c @ p["wv"] + p["bv"][0]
    v2 = g @ p["wv"] + p["bv"][0]
    N, H = q.shape
    hd = H // num_heads
    qh = q.reshape(N, num_heads, hd)
    kh = jnp.stack([k1, k2], 1).reshape(N, 2, num_heads, hd)
    vh = jnp.stack([v1, v2], 1).reshape(N, 2, num_heads, hd)
    s = jnp.einsum("nhd,nshd->nhs", qh, kh) / jnp.sqrt(hd).astype(jnp.float32)
    w = jax.nn.softmax(s, axis=-1)
    o = jnp.einsum("nhs,nshd->nhd", w, vh).reshape(N, H)
    attn_out = o @ p["wo"] + p["bo"][0]
    y = attn_out @ p["wp"] + p["bp"][0]
    mu = y.mean(-1, keepdims=True)
    var = ((y - mu) ** 2).mean(-1, keepdims=True)
    y = (y - mu) / jnp.sqrt(var + 1e-5) * p["gamma"][0] + p["beta"][0]
    return jnp.maximum(y, 0.0)


if __name__ == "__main__":
    N, classic_dim, graph_dim, hidden_dim, num_heads = 16, 12, 20, 32, 8

    key = jax.random.PRNGKey(0)
    keys = jax.random.split(key, 20)

    def rnd(k, shape, scale=0.2):
        return (scale * jax.random.normal(k, shape)).astype(jnp.float32)

    f_classic = rnd(keys[0], (N, classic_dim), 1.0)
    f_graph = rnd(keys[1], (N, graph_dim), 1.0)

    params = {
        "wc": rnd(keys[2], (classic_dim, hidden_dim)),
        "bc": rnd(keys[3], (1, hidden_dim)),
        "wg": rnd(keys[4], (graph_dim, hidden_dim)),
        "bg": rnd(keys[5], (1, hidden_dim)),
        "wq": rnd(keys[6], (hidden_dim, hidden_dim)),
        "bq": rnd(keys[7], (1, hidden_dim)),
        "wk": rnd(keys[8], (hidden_dim, hidden_dim)),
        "bk": rnd(keys[9], (1, hidden_dim)),
        "wv": rnd(keys[10], (hidden_dim, hidden_dim)),
        "bv": rnd(keys[11], (1, hidden_dim)),
        "wo": rnd(keys[12], (hidden_dim, hidden_dim)),
        "bo": rnd(keys[13], (1, hidden_dim)),
        "wp": rnd(keys[14], (hidden_dim, hidden_dim)),
        "bp": rnd(keys[15], (1, hidden_dim)),
        "gamma": jnp.ones((1, hidden_dim), jnp.float32),
        "beta": jnp.zeros((1, hidden_dim), jnp.float32),
    }

    out = multihead_attention_fusion(f_classic, f_graph, params,
                                     num_heads=num_heads)
    out = jax.block_until_ready(out)

    ref = _reference(f_classic, f_graph, params, num_heads)
    assert out.shape == (N, hidden_dim)
    assert jnp.allclose(out, ref, atol=2e-4, rtol=2e-4), "mismatch vs reference"

    print("KERNEL_OK")
</pallas_src>

<mosaic_0001>
module attributes {stable_mosaic.version = 11 : i64} {
  func.func @_fusion_kernel(%arg0: i32, %arg1: memref<4x128xf32, #tpu.memory_space<vmem>>, %arg2: memref<128x512xf32, #tpu.memory_space<vmem>>, %arg3: memref<1x512xf32, #tpu.memory_space<vmem>>, %arg4: memref<128x128xf32, #tpu.memory_space<vmem>>, %arg5: memref<128x128xf32, #tpu.memory_space<vmem>>, %arg6: memref<1x128xf32, #tpu.memory_space<vmem>>, %arg7: memref<128x128xf32, #tpu.memory_space<vmem>>, %arg8: memref<1x128xf32, #tpu.memory_space<vmem>>, %arg9: memref<1x128xf32, #tpu.memory_space<vmem>>, %arg10: memref<4x128xf32, #tpu.memory_space<vmem>>) attributes {dimension_semantics = [#tpu.dimension_semantics<parallel>], iteration_bounds = array<i64: 1>, scalar_prefetch = 0 : i64, scratch_operands = 0 : i64, tpu.core_type = #tpu.core_type<tc>, window_params = [{transform_indices = @transform_0, window_bounds = array<i64: 4, 128>}, {pipeline_mode = #tpu.pipeline_mode<synchronous>, transform_indices = @transform_1, window_bounds = array<i64: 128, 512>}, {pipeline_mode = #tpu.pipeline_mode<synchronous>, transform_indices = @transform_2, window_bounds = array<i64: 1, 512>}, {pipeline_mode = #tpu.pipeline_mode<synchronous>, transform_indices = @transform_3, window_bounds = array<i64: 128, 128>}, {pipeline_mode = #tpu.pipeline_mode<synchronous>, transform_indices = @transform_4, window_bounds = array<i64: 128, 128>}, {pipeline_mode = #tpu.pipeline_mode<synchronous>, transform_indices = @transform_5, window_bounds = array<i64: 1, 128>}, {pipeline_mode = #tpu.pipeline_mode<synchronous>, transform_indices = @transform_6, window_bounds = array<i64: 128, 128>}, {pipeline_mode = #tpu.pipeline_mode<synchronous>, transform_indices = @transform_7, window_bounds = array<i64: 1, 128>}, {pipeline_mode = #tpu.pipeline_mode<synchronous>, transform_indices = @transform_8, window_bounds = array<i64: 1, 128>}, {transform_indices = @transform_9, window_bounds = array<i64: 4, 128>}]} {
    %c0 = arith.constant 0 : index
    %c0_0 = arith.constant 0 : index
    %0 = vector.load %arg1[%c0, %c0_0] : memref<4x128xf32, #tpu.memory_space<vmem>>, vector<4x128xf32>
    %c0_1 = arith.constant 0 : index
    %c0_2 = arith.constant 0 : index
    %1 = vector.load %arg2[%c0_1, %c0_2] : memref<128x512xf32, #tpu.memory_space<vmem>>, vector<128x512xf32>
    %cst = arith.constant dense<0.000000e+00> : vector<4x512xf32>
    %2 = tpu.matmul %0, %1, %cst {dimension_numbers = #tpu.dot_dimension_numbers<[1], [0], [0], [1], [0, 0, 1, 1], [], []>} : vector<4x128xf32>, vector<128x512xf32>, vector<4x512xf32> -> vector<4x512xf32>
    %c0_3 = arith.constant 0 : index
    %c0_4 = arith.constant 0 : index
    %3 = vector.load %arg3[%c0_3, %c0_4] : memref<1x512xf32, #tpu.memory_space<vmem>>, vector<1x512xf32>
    %4 = vector.broadcast %3 : vector<1x512xf32> to vector<4x512xf32>
    %5 = arith.addf %2, %4 : vector<4x512xf32>
    %6 = vector.extract_strided_slice %5 {offsets = [0, 0], sizes = [4, 128], strides = [1, 1]} : vector<4x512xf32> to vector<4x128xf32>
    %7 = vector.extract_strided_slice %5 {offsets = [0, 128], sizes = [4, 128], strides = [1, 1]} : vector<4x512xf32> to vector<4x128xf32>
    %8 = vector.extract_strided_slice %5 {offsets = [0, 256], sizes = [4, 128], strides = [1, 1]} : vector<4x512xf32> to vector<4x128xf32>
    %9 = vector.extract_strided_slice %5 {offsets = [0, 384], sizes = [4, 128], strides = [1, 1]} : vector<4x512xf32> to vector<4x128xf32>
    %10 = arith.mulf %6, %7 : vector<4x128xf32>
    %c0_5 = arith.constant 0 : index
    %c0_6 = arith.constant 0 : index
    %11 = vector.load %arg4[%c0_5, %c0_6] : memref<128x128xf32, #tpu.memory_space<vmem>>, vector<128x128xf32>
    %cst_7 = arith.constant dense<0.000000e+00> : vector<4x128xf32>
    %12 = tpu.matmul %10, %11, %cst_7 {dimension_numbers = #tpu.dot_dimension_numbers<[1], [0], [0], [1], [0, 0, 1, 1], [], []>} : vector<4x128xf32>, vector<128x128xf32>, vector<4x128xf32> -> vector<4x128xf32>
    %13 = math.tanh %12 : vector<4x128xf32>
    %14 = arith.mulf %13, %9 : vector<4x128xf32>
    %15 = arith.addf %8, %14 : vector<4x128xf32>
    %c0_8 = arith.constant 0 : index
    %c0_9 = arith.constant 0 : index
    %16 = vector.load %arg5[%c0_8, %c0_9] : memref<128x128xf32, #tpu.memory_space<vmem>>, vector<128x128xf32>
    %cst_10 = arith.constant dense<0.000000e+00> : vector<4x128xf32>
    %17 = tpu.matmul %15, %16, %cst_10 {dimension_numbers = #tpu.dot_dimension_numbers<[1], [0], [0], [1], [0, 0, 1, 1], [], []>} : vector<4x128xf32>, vector<128x128xf32>, vector<4x128xf32> -> vector<4x128xf32>
    %c0_11 = arith.constant 0 : index
    %c0_12 = arith.constant 0 : index
    %18 = vector.load %arg6[%c0_11, %c0_12] : memref<1x128xf32, #tpu.memory_space<vmem>>, vector<1x128xf32>
    %19 = vector.broadcast %18 : vector<1x128xf32> to vector<4x128xf32>
    %20 = arith.addf %17, %19 : vector<4x128xf32>
    %21 = arith.mulf %20, %20 : vector<4x128xf32>
    %c0_13 = arith.constant 0 : index
    %c0_14 = arith.constant 0 : index
    %22 = vector.load %arg7[%c0_13, %c0_14] : memref<128x128xf32, #tpu.memory_space<vmem>>, vector<128x128xf32>
    %cst_15 = arith.constant dense<0.000000e+00> : vector<4x128xf32>
    %23 = tpu.matmul %21, %22, %cst_15 {dimension_numbers = #tpu.dot_dimension_numbers<[1], [0], [0], [1], [0, 0, 1, 1], [], []>} : vector<4x128xf32>, vector<128x128xf32>, vector<4x128xf32> -> vector<4x128xf32>
    %cst_16 = arith.constant 9.99999974E-6 : f32
    %24 = vector.broadcast %cst_16 : f32 to vector<4x128xf32>
    %25 = arith.addf %23, %24 : vector<4x128xf32>
    %26 = math.rsqrt %25 : vector<4x128xf32>
    %27 = arith.mulf %20, %26 : vector<4x128xf32>
    %c0_17 = arith.constant 0 : index
    %c0_18 = arith.constant 0 : index
    %28 = vector.load %arg8[%c0_17, %c0_18] : memref<1x128xf32, #tpu.memory_space<vmem>>, vector<1x128xf32>
    %29 = vector.broadcast %28 : vector<1x128xf32> to vector<4x128xf32>
    %30 = arith.mulf %27, %29 : vector<4x128xf32>
    %c0_19 = arith.constant 0 : index
    %c0_20 = arith.constant 0 : index
    %31 = vector.load %arg9[%c0_19, %c0_20] : memref<1x128xf32, #tpu.memory_space<vmem>>, vector<1x128xf32>
    %32 = vector.broadcast %31 : vector<1x128xf32> to vector<4x128xf32>
    %33 = arith.addf %30, %32 : vector<4x128xf32>
    %cst_21 = arith.constant 0.000000e+00 : f32
    %34 = vector.broadcast %cst_21 : f32 to vector<4x128xf32>
    %35 = arith.maximumf %33, %34 : vector<4x128xf32>
    %c0_22 = arith.constant 0 : index
    %c0_23 = arith.constant 0 : index
    %36 = vector.load %arg10[%c0_22, %c0_23] : memref<4x128xf32, #tpu.memory_space<vmem>>, vector<4x128xf32>
    tpu.vector_store %arg10[%c0_22, %c0_23], %35 {strides = array<i32>} : memref<4x128xf32, #tpu.memory_space<vmem>>, vector<4x128xf32>,
    return
  }
  func.func @transform_0(%arg0: i32) -> (i32, i32) {
    %c0_i32 = arith.constant 0 : i32
    %c0_i32_0 = arith.constant 0 : i32
    return %arg0, %c0_i32 : i32, i32
  }
  func.func @transform_1(%arg0: i32) -> (i32, i32) {
    %c0_i32 = arith.constant 0 : i32
    %c0_i32_0 = arith.constant 0 : i32
    %c0_i32_1 = arith.constant 0 : i32
    return %c0_i32, %c0_i32_0 : i32, i32
  }
  func.func @transform_2(%arg0: i32) -> (i32, i32) {
    %c0_i32 = arith.constant 0 : i32
    %c0_i32_0 = arith.constant 0 : i32
    %c0_i32_1 = arith.constant 0 : i32
    return %c0_i32, %c0_i32_0 : i32, i32
  }
  func.func @transform_3(%arg0: i32) -> (i32, i32) {
    %c0_i32 = arith.constant 0 : i32
    %c0_i32_0 = arith.constant 0 : i32
    %c0_i32_1 = arith.constant 0 : i32
    return %c0_i32, %c0_i32_0 : i32, i32
  }
  func.func @transform_4(%arg0: i32) -> (i32, i32) {
    %c0_i32 = arith.constant 0 : i32
    %c0_i32_0 = arith.constant 0 : i32
    %c0_i32_1 = arith.constant 0 : i32
    return %c0_i32, %c0_i32_0 : i32, i32
  }
  func.func @transform_5(%arg0: i32) -> (i32, i32) {
    %c0_i32 = arith.constant 0 : i32
    %c0_i32_0 = arith.constant 0 : i32
    %c0_i32_1 = arith.constant 0 : i32
    return %c0_i32, %c0_i32_0 : i32, i32
  }
  func.func @transform_6(%arg0: i32) -> (i32, i32) {
    %c0_i32 = arith.constant 0 : i32
    %c0_i32_0 = arith.constant 0 : i32
    %c0_i32_1 = arith.constant 0 : i32
    return %c0_i32, %c0_i32_0 : i32, i32
  }
  func.func @transform_7(%arg0: i32) -> (i32, i32) {
    %c0_i32 = arith.constant 0 : i32
    %c0_i32_0 = arith.constant 0 : i32
    %c0_i32_1 = arith.constant 0 : i32
    return %c0_i32, %c0_i32_0 : i32, i32
  }
  func.func @transform_8(%arg0: i32) -> (i32, i32) {
    %c0_i32 = arith.constant 0 : i32
    %c0_i32_0 = arith.constant 0 : i32
    %c0_i32_1 = arith.constant 0 : i32
    return %c0_i32, %c0_i32_0 : i32, i32
  }
  func.func @transform_9(%arg0: i32) -> (i32, i32) {
    %c0_i32 = arith.constant 0 : i32
    %c0_i32_0 = arith.constant 0 : i32
    return %arg0, %c0_i32 : i32, i32
  }
}

</mosaic_0001>

<bundles_post_ra>
// kernel: tpu_custom_call.1
= control target key start
LH: loop header
LB: loop body
LE: loop exit
PB: predicated region body
PF: predicated region fallthrough
CT: control target
= control target key end

     0   :  { %14 = vsyncpa [#allocation3], 0  ;;  %s1291_s0 = inlined_call_operand.hbm [shape: f32[4,128], index: 0, kind: input, shape index: {}]   ;;  %s1292_s1 = inlined_call_operand.hbm [shape: f32[128,512], index: 1, kind: input, shape index: {}]   ;;  %s1293_s2 = inlined_call_operand.vmem [shape: f32[1,512], index: 2, kind: input, shape index: {}]   ;;  %s1294_s3 = inlined_call_operand.hbm [shape: f32[128,128], index: 3, kind: input, shape index: {}]   ;;  %s1295_s4 = inlined_call_operand.hbm [shape: f32[128,128], index: 4, kind: input, shape index: {}]   ;;  %s1296_s5 = inlined_call_operand.vmem [shape: f32[1,128], index: 5, kind: input, shape index: {}]   ;;  %s1297_s6 = inlined_call_operand.hbm [shape: f32[128,128], index: 6, kind: input, shape index: {}]   ;;  %s1298_s7 = inlined_call_operand.vmem [shape: f32[1,128], index: 7, kind: input, shape index: {}]   ;;  %s1299_s8 = inlined_call_operand.vmem [shape: f32[1,128], index: 8, kind: input, shape index: {}]   ;;  %s1300_s9 = inlined_call_operand.hbm [shape: f32[4,128], index: 9, kind: output, shape index: {}]  }
   0x1   :  { %15 = vsyncpa [#allocation6], 0 }
   0x2   :  { %16 = vsyncpa [#allocation9], 0 }
   0x3   :  { %17 = vsyncpa [#allocation4], 0  ;;  %s1087_s30 = smov [#allocation5]   ;;  %s947_s13 = scalar_lea.hbm %s1292_s1, 8192 }
   0x4   :  { %s33_s10 = sshll.u32 %s1087_s30, 4  ;;  %p948_p0 = scmp.ne.s32.totalorder %s1292_s1, %s947_s13  ;;  %s34_s10 = int_to_ptr.vmem [resolvable:$true] %s33_s10 }
   0x5   :  { %p951_p1 = scmp.lt.u32.totalorder %s947_s13, %s1292_s1 }
   0x7   :  { %p953_p2 = pnand %p951_p1, %p948_p0 }
   0x9   :  { %956 = shalt.err (!%p953_p2)
}
   0xa   :  { %s957_s18 = scalar_lea.vmem %s34_s10, 8192  ;;  %p962_p4 = scmp.lt.s32.totalorder %s34_s10, %s34_s10 }
   0xb   :  { %p958_p3 = scmp.ne.s32.totalorder %s34_s10, %s957_s18  ;;  %p963_p5 = scmp.lt.s32.totalorder %s957_s18, %s957_s18 }
   0xd   :  { %p964_p6 = por %p963_p5, %p962_p4 }
   0xf   :  { %p965_p7 = pnand %p964_p6, %p958_p3 }
  0x11   :  { %968 = shalt.err (!%p965_p7)
}
  0x12   :  { %s1088_s19 = smov 512   ;;  %s1089_s20 = smov 32  }
  0x13   :  { %39 = dma.hbm_to_vmem [thread:$0]  %s1292_s1, 8192, %s34_s10, [#allocation6], %s1088_s19, %s1088_s19, %s1089_s20  }
  0x14   :  { %s1090_s23 = smov [#allocation8]   ;;  %s1091_s25 = smov [#allocation2]  }
  0x15   :  { %s59_s24 = sshll.u32 %s1090_s23, 4  ;;  %s24_s26 = sshll.u32 %s1091_s25, 4  ;;  %s60_s24 = int_to_ptr.vmem [resolvable:$true] %s59_s24  ;;  %s25_s26 = int_to_ptr.vmem [resolvable:$true] %s24_s26 }
  0x16   :  { %s969_s29 = scalar_lea.hbm %s1295_s4, 2048 }
  0x17   :  { %p970_p8 = scmp.ne.s32.totalorder %s1295_s4, %s969_s29  ;;  %p973_p9 = scmp.lt.u32.totalorder %s969_s29, %s1295_s4 }
  0x19   :  { %p975_p10 = pnand %p973_p9, %p970_p8 }
  0x1b   :  { %978 = shalt.err (!%p975_p10)
}
  0x1c   :  { %s979_s1 = scalar_lea.vmem %s60_s24, 2048  ;;  %p984_p12 = scmp.lt.s32.totalorder %s60_s24, %s60_s24 }
  0x1d   :  { %p980_p11 = scmp.ne.s32.totalorder %s60_s24, %s979_s1  ;;  %p985_p13 = scmp.lt.s32.totalorder %s979_s1, %s979_s1 }
  0x1f   :  { %p986_p0 = por %p985_p13, %p984_p12 }
  0x21   :  { %p987_p1 = pnand %p986_p0, %p980_p11 }
  0x23   :  { %990 = shalt.err (!%p987_p1)
}
  0x24   :  { %s1092_s10 = smov 128   ;;  %s1093_s14 = smov 8  }
  0x25   :  { %65 = dma.hbm_to_vmem [thread:$0]  %s1295_s4, 2048, %s60_s24, [#allocation9], %s1092_s10, %s1092_s10, %s1093_s14  }
  0x26   :  { %s991_s19 = scalar_lea.hbm %s1291_s0, 64 }
  0x27   :  { %p992_p2 = scmp.ne.s32.totalorder %s1291_s0, %s991_s19  ;;  %p995_p3 = scmp.lt.u32.totalorder %s991_s19, %s1291_s0 }
  0x29   :  { %p997_p4 = pnand %p995_p3, %p992_p2 }
  0x2b   :  { %1000 = shalt.err (!%p997_p4)
}
  0x2c   :  { %s1001_s25 = scalar_lea.vmem %s25_s26, 64  ;;  %p1006_p6 = scmp.lt.s32.totalorder %s25_s26, %s25_s26 }
  0x2d   :  { %p1002_p5 = scmp.ne.s32.totalorder %s25_s26, %s1001_s25  ;;  %p1007_p7 = scmp.lt.s32.totalorder %s1001_s25, %s1001_s25 }
  0x2f   :  { %p1008_p8 = por %p1007_p7, %p1006_p6 }
  0x31   :  { %p1009_p9 = pnand %p1008_p8, %p1002_p5 }
  0x33   :  { %1012 = shalt.err (!%p1009_p9)
}
  0x34   :  { %27 = dma.hbm_to_vmem [thread:$0]  %s1291_s0, 64, %s25_s26, [#allocation3]  }
  0x35   :  { %s1094_s27 = smov [#allocation7]   ;;  %s1095_s29 = smov [#allocation10]  }
  0x36   :  { %s47_s28 = sshll.u32 %s1094_s27, 4  ;;  %s73_s30 = sshll.u32 %s1095_s29, 4  ;;  %s48_s28 = int_to_ptr.vmem [resolvable:$true] %s47_s28  ;;  %s74_s30 = int_to_ptr.vmem [resolvable:$true] %s73_s30 }
  0x37   :  { %s1013_s13 = scalar_lea.hbm %s1294_s3, 2048 }
  0x38   :  { %p1014_p10 = scmp.ne.s32.totalorder %s1294_s3, %s1013_s13  ;;  %p1017_p11 = scmp.lt.u32.totalorder %s1013_s13, %s1294_s3 }
  0x3a   :  { %p1019_p12 = pnand %p1017_p11, %p1014_p10 }
  0x3c   :  { %1022 = shalt.err (!%p1019_p12)
}
  0x3d   :  { %s1023_s0 = scalar_lea.vmem %s48_s28, 2048  ;;  %p1028_p0 = scmp.lt.s32.totalorder %s48_s28, %s48_s28 }
  0x3e   :  { %p1024_p13 = scmp.ne.s32.totalorder %s48_s28, %s1023_s0  ;;  %p1029_p1 = scmp.lt.s32.totalorder %s1023_s0, %s1023_s0 }
  0x40   :  { %p1030_p2 = por %p1029_p1, %p1028_p0 }
  0x42   :  { %p1031_p3 = pnand %p1030_p2, %p1024_p13 }
  0x44   :  { %1034 = shalt.err (!%p1031_p3)
}
  0x45   :  { %53 = dma.hbm_to_vmem [thread:$0]  %s1294_s3, 2048, %s48_s28, [#allocation6], %s1092_s10, %s1092_s10, %s1093_s14  }
  0x46   :  { %s1035_s21 = scalar_lea.hbm %s1297_s6, 2048 }
  0x47   :  { %p1036_p4 = scmp.ne.s32.totalorder %s1297_s6, %s1035_s21  ;;  %p1039_p5 = scmp.lt.u32.totalorder %s1035_s21, %s1297_s6 }
  0x49   :  { %p1041_p6 = pnand %p1039_p5, %p1036_p4 }
  0x4b   :  { %1044 = shalt.err (!%p1041_p6)
}
  0x4c   :  { %s1045_s24 = scalar_lea.vmem %s74_s30, 2048  ;;  %p1050_p8 = scmp.lt.s32.totalorder %s74_s30, %s74_s30 }
  0x4d   :  { %p1046_p7 = scmp.ne.s32.totalorder %s74_s30, %s1045_s24  ;;  %p1051_p9 = scmp.lt.s32.totalorder %s1045_s24, %s1045_s24 }
  0x4f   :  { %p1052_p10 = por %p1051_p9, %p1050_p8 }
  0x51   :  { %p1053_p11 = pnand %p1052_p10, %p1046_p7 }
  0x53   :  { %1056 = shalt.err (!%p1053_p11)
}
  0x54   :  { %79 = dma.hbm_to_vmem [thread:$0]  %s1297_s6, 2048, %s74_s30, [#allocation9], %s1092_s10, %s1092_s10, %s1093_s14  }
  0x55   :  { %1079 = dma.done.wait [#allocation3], 64  }
  0x56   :  { %1080 = vsyncadd [#allocation3], 4294967232 }
  0x57   :  { %1081 = dma.done.wait [#allocation6], 10240  }
  0x58   :  { %1082 = vsyncadd [#allocation6], 4294957056 }
  0x59   :  { %1083 = dma.done.wait [#allocation9], 4096  }
  0x5a   :  { %1084 = vsyncadd [#allocation9], 4294963200  ;;  %v1096_v0 = vmov 0.0   ;;  %v101_v1 = vld [vmem:[#allocation5 + $0x8] sm:$0xff]  ;;  %v100_v3 = vld [vmem:[#allocation5] sm:$0xff]  ;;  %vm1098_vm0 = vmmov 0  }
  0x5b   :  { %250 = vmatprep.mubr.f32.mxu0 %v1096_v0  ;;  %321 = vmatprep.mubr.f32.mxu1 %v1096_v0  ;;  %v105_v2 = vld [vmem:[#allocation5 + $0x28] sm:$0xff]  ;;  %v104_v5 = vld [vmem:[#allocation5 + $0x20] sm:$0xff]  ;;  %v103_v29 = vld [vmem:[#allocation5 + $0x18] sm:$0xff] }
  0x5c   :  { %v794_v4 = vpack.c.bf16 %v105_v2, %v101_v1  ;;  %v109_v6 = vld [vmem:[#allocation5 + $0x48] sm:$0xff]  ;;  %v796_v8 = vpack.c.bf16 %v104_v5, %v100_v3  ;;  %v108_v10 = vld [vmem:[#allocation5 + $0x40] sm:$0xff]  ;;  %v107_v30 = vld [vmem:[#allocation5 + $0x38] sm:$0xff] }
  0x5d   :  { %v113_v7 = vld [vmem:[#allocation5 + $0x68] sm:$0xff]  ;;  %v112_v11 = vld [vmem:[#allocation5 + $0x60] sm:$0xff]  ;;  %v826_v33 = vpack.c.bf16 %v107_v30, %v103_v29  ;;  %v102_v34 = vld [vmem:[#allocation5 + $0x10] sm:$0xff] }
  0x5e   :  { %v798_v9 = vpack.c.bf16 %v113_v7, %v109_v6  ;;  %v117_v12 = vld [vmem:[#allocation5 + $0x88] sm:$0xff]  ;;  %795 = vmatprep.subr.bf16.mxu0 %v794_v4  ;;  %v800_v14 = vpack.c.bf16 %v112_v11, %v108_v10  ;;  %v116_v16 = vld [vmem:[#allocation5 + $0x80] sm:$0xff]  ;;  %v106_v35 = vld [vmem:[#allocation5 + $0x30] sm:$0xff] }
  0x5f   :  { %v121_v13 = vld [vmem:[#allocation5 + $0xa8] sm:$0xff]  ;;  %797 = vmatpush1.bf16.msra.mxu0 %v796_v8  ;;  %v120_v17 = vld [vmem:[#allocation5 + $0xa0] sm:$0xff]  ;;  %v828_v37 = vpack.c.bf16 %v106_v35, %v102_v34  ;;  %v111_v38 = vld [vmem:[#allocation5 + $0x58] sm:$0xff]  ;;  %827 = vmatprep.subr.bf16.mxu1 %v826_v33 }
  0x60   :  { %799 = vmatprep.subr.bf16.mxu0 %v798_v9  ;;  %v802_v15 = vpack.c.bf16 %v121_v13, %v117_v12  ;;  %v125_v18 = vld [vmem:[#allocation5 + $0xc8] sm:$0xff]  ;;  %v804_v20 = vpack.c.bf16 %v120_v17, %v116_v16  ;;  %v124_v22 = vld [vmem:[#allocation5 + $0xc0] sm:$0xff]  ;;  %v115_v39 = vld [vmem:[#allocation5 + $0x78] sm:$0xff] }
  0x61   :  { %v129_v19 = vld [vmem:[#allocation5 + $0xe8] sm:$0xff]  ;;  %v128_v23 = vld [vmem:[#allocation5 + $0xe0] sm:$0xff]  ;;  %v830_v41 = vpack.c.bf16 %v115_v39, %v111_v38  ;;  %v110_v42 = vld [vmem:[#allocation5 + $0x50] sm:$0xff]  ;;  %829 = vmatpush1.bf16.msra.mxu1 %v828_v37 }
  0x62   :  { %v806_v21 = vpack.c.bf16 %v129_v19, %v125_v18  ;;  %v133_v24 = vld [vmem:[#allocation5 + $0x108] sm:$0xff]  ;;  %v132_v26 = vld [vmem:[#allocation5 + $0x100] sm:$0xff]  ;;  %v808_v27 = vpack.c.bf16 %v128_v23, %v124_v22  ;;  %v114_v43 = vld [vmem:[#allocation5 + $0x70] sm:$0xff] }
  0x63   :  { %801 = vmatpush1.bf16.msra.mxu0 %v800_v14  ;;  %v137_v25 = vld [vmem:[#allocation5 + $0x128] sm:$0xff]  ;;  %v136_v28 = vld [vmem:[#allocation5 + $0x120] sm:$0xff]  ;;  %v832_v46 = vpack.c.bf16 %v114_v43, %v110_v42  ;;  %v119_v47 = vld [vmem:[#allocation5 + $0x98] sm:$0xff]  ;;  %831 = vmatprep.subr.bf16.mxu1 %v830_v41 }
  0x64   :  { %803 = vmatprep.subr.bf16.mxu0 %v802_v15  ;;  %v810_v31 = vpack.c.bf16 %v137_v25, %v133_v24  ;;  %v141_v32 = vld [vmem:[#allocation5 + $0x148] sm:$0xff]  ;;  %v140_v40 = vld [vmem:[#allocation5 + $0x140] sm:$0xff]  ;;  %v812_v44 = vpack.c.bf16 %v136_v28, %v132_v26  ;;  %v123_v48 = vld [vmem:[#allocation5 + $0xb8] sm:$0xff] }
  0x65   :  { %v145_v36 = vld [vmem:[#allocation5 + $0x168] sm:$0xff]  ;;  %v144_v45 = vld [vmem:[#allocation5 + $0x160] sm:$0xff]  ;;  %v834_v51 = vpack.c.bf16 %v123_v48, %v119_v47  ;;  %v118_v52 = vld [vmem:[#allocation5 + $0x90] sm:$0xff]  ;;  %833 = vmatpush1.bf16.msra.mxu1 %v832_v46 }
  0x66   :  { %v814_v49 = vpack.c.bf16 %v145_v36, %v141_v32  ;;  %v149_v50 = vld [vmem:[#allocation5 + $0x188] sm:$0xff]  ;;  %v122_v53 = vld [vmem:[#allocation5 + $0xb0] sm:$0xff]  ;;  %v127_v55 = vld [vmem:[#allocation5 + $0xd8] sm:$0xff]  ;;  %v816_v57 = vpack.c.bf16 %v144_v45, %v140_v40 }
  0x67   :  { %805 = vmatpush1.bf16.msra.mxu0 %v804_v20  ;;  %v153_v54 = vld [vmem:[#allocation5 + $0x1a8] sm:$0xff]  ;;  %v131_v56 = vld [vmem:[#allocation5 + $0xf8] sm:$0xff]  ;;  %v148_v58 = vld [vmem:[#allocation5 + $0x180] sm:$0xff]  ;;  %v836_v60 = vpack.c.bf16 %v122_v53, %v118_v52  ;;  %835 = vmatprep.subr.bf16.mxu1 %v834_v51  ;;  %v1097_v20 = vmov 0.0|0.0  }
  0x68   :  { %807 = vmatprep.subr.bf16.mxu0 %v806_v21  ;;  %v152_v59 = vld [vmem:[#allocation5 + $0x1a0] sm:$0xff]  ;;  %v818_v61 = vpack.c.bf16 %v153_v54, %v149_v50  ;;  %v157_v62 = vld [vmem:[#allocation5 + $0x1c8] sm:$0xff]  ;;  %v838_v63 = vpack.c.bf16 %v131_v56, %v127_v55  ;;  %v126_v1 = vld [vmem:[#allocation5 + $0xd0] sm:$0xff] }
  0x69   :  { %v130_v2 = vld [vmem:[#allocation5 + $0xf0] sm:$0xff]  ;;  %v161_v3 = vld [vmem:[#allocation5 + $0x1e8] sm:$0xff]  ;;  %v135_v4 = vld [vmem:[#allocation5 + $0x118] sm:$0xff]  ;;  %v820_v6 = vpack.c.bf16 %v152_v59, %v148_v58  ;;  %837 = vmatpush1.bf16.msra.mxu1 %v836_v60 }
  0x6a   :  { %v139_v5 = vld [vmem:[#allocation5 + $0x138] sm:$0xff]  ;;  %v156_v7 = vld [vmem:[#allocation5 + $0x1c0] sm:$0xff]  ;;  %v840_v8 = vpack.c.bf16 %v130_v2, %v126_v1  ;;  %v822_v9 = vpack.c.bf16 %v161_v3, %v157_v62  ;;  %839 = vmatprep.subr.bf16.mxu1 %v838_v63  ;;  %v134_v12 = vld [vmem:[#allocation5 + $0x110] sm:$0xff] }
  0x6b   :  { %809 = vmatpush1.bf16.msra.mxu0 %v808_v27  ;;  %v160_v10 = vld [vmem:[#allocation5 + $0x1e0] sm:$0xff]  ;;  %v842_v11 = vpack.c.bf16 %v139_v5, %v135_v4  ;;  %v138_v13 = vld [vmem:[#allocation5 + $0x130] sm:$0xff]  ;;  %v330_v17 = vld [vmem:[#allocation7 + $0x8] sm:$0xff] }
  0x6c   :  { %811 = vmatprep.subr.bf16.mxu0 %v810_v31  ;;  %v824_v14 = vpack.c.bf16 %v160_v10, %v156_v7  ;;  %v844_v15 = vpack.c.bf16 %v138_v13, %v134_v12  ;;  %v329_v16 = vld [vmem:[#allocation7] sm:$0xff]  ;;  %v1221_v18 = vld [vmem:[#allocation2] sm:$0xf]  ;;  %v331_v21 = vld [vmem:[#allocation7 + $0x10] sm:$0xff] }
  0x6d   :  { %841 = vmatpush1.bf16.msra.mxu1 %v840_v8  ;;  %v859_v19 = vpack.c.bf16 %v330_v17, %v329_v16  ;;  %v332_v22 = vld [vmem:[#allocation7 + $0x18] sm:$0xff]  ;;  %v333_v24 = vld [vmem:[#allocation7 + $0x20] sm:$0xff]  ;;  %v334_v25 = vld [vmem:[#allocation7 + $0x28] sm:$0xff] }
  0x6e   :  { %843 = vmatprep.subr.bf16.mxu1 %v842_v11  ;;  %v862_v23 = vpack.c.bf16 %v332_v22, %v331_v21  ;;  %v865_v26 = vpack.c.bf16 %v334_v25, %v333_v24  ;;  %v335_v27 = vld [vmem:[#allocation7 + $0x30] sm:$0xff]  ;;  %v336_v28 = vld [vmem:[#allocation7 + $0x38] sm:$0xff]  ;;  %v337_v30 = vld [vmem:[#allocation7 + $0x40] sm:$0xff] }
  0x6f   :  { %813 = vmatpush1.bf16.msra.mxu0 %v812_v44  ;;  %v868_v29 = vpack.c.bf16 %v336_v28, %v335_v27  ;;  %v338_v31 = vld [vmem:[#allocation7 + $0x48] sm:$0xff]  ;;  %v339_v33 = vld [vmem:[#allocation7 + $0x50] sm:$0xff]  ;;  %v340_v34 = vld [vmem:[#allocation7 + $0x58] sm:$0xff] }
  0x70   :  { %815 = vmatprep.subr.bf16.mxu0 %v814_v49  ;;  %v871_v32 = vpack.c.bf16 %v338_v31, %v337_v30  ;;  %v874_v35 = vpack.c.bf16 %v340_v34, %v339_v33  ;;  %v341_v36 = vld [vmem:[#allocation7 + $0x60] sm:$0xff]  ;;  %v342_v37 = vld [vmem:[#allocation7 + $0x68] sm:$0xff]  ;;  %v143_v39 = vld [vmem:[#allocation5 + $0x158] sm:$0xff] }
  0x71   :  { %845 = vmatpush1.bf16.msra.mxu1 %v844_v15  ;;  %v877_v38 = vpack.c.bf16 %v342_v37, %v341_v36  ;;  %v147_v40 = vld [vmem:[#allocation5 + $0x178] sm:$0xff]  ;;  %v142_v42 = vld [vmem:[#allocation5 + $0x150] sm:$0xff]  ;;  %v418_v59 = vld [vmem:[#allocation8] sm:$0xff] }
  0x72   :  { %v846_v41 = vpack.c.bf16 %v147_v40, %v143_v39  ;;  %v146_v43 = vld [vmem:[#allocation5 + $0x170] sm:$0xff]  ;;  %v344_v46 = vld [vmem:[#allocation7 + $0x78] sm:$0xff]  ;;  %v419_v60 = vld [vmem:[#allocation8 + $0x8] sm:$0xff] }
  0x73   :  { %817 = vmatpush1.bf16.msra.mxu0 %v816_v57  ;;  %v848_v44 = vpack.c.bf16 %v146_v43, %v142_v42  ;;  %v343_v45 = vld [vmem:[#allocation7 + $0x70] sm:$0xff]  ;;  %v151_v48 = vld [vmem:[#allocation5 + $0x198] sm:$0xff]  ;;  %v883_v62 = vpack.c.bf16 %v419_v60, %v418_v59  ;;  %v422_v3 = vld [vmem:[#allocation8 + $0x20] sm:$0xff] }
  0x74   :  { %819 = vmatprep.subr.bf16.mxu0 %v818_v61  ;;  %847 = vmatprep.subr.bf16.mxu1 %v846_v41  ;;  %v880_v47 = vpack.c.bf16 %v344_v46, %v343_v45  ;;  %v155_v49 = vld [vmem:[#allocation5 + $0x1b8] sm:$0xff]  ;;  %v150_v51 = vld [vmem:[#allocation5 + $0x190] sm:$0xff]  ;;  %v423_v4 = vld [vmem:[#allocation8 + $0x28] sm:$0xff] }
  0x75   :  { %849 = vmatpush1.bf16.msra.mxu1 %v848_v44  ;;  %v850_v50 = vpack.c.bf16 %v155_v49, %v151_v48  ;;  %v154_v52 = vld [vmem:[#allocation5 + $0x1b0] sm:$0xff]  ;;  %v159_v54 = vld [vmem:[#allocation5 + $0x1d8] sm:$0xff]  ;;  %v889_v5 = vpack.c.bf16 %v423_v4, %v422_v3  ;;  %v426_v22 = vld [vmem:[#allocation8 + $0x40] sm:$0xff] }
  0x76   :  { %v852_v53 = vpack.c.bf16 %v154_v52, %v150_v51  ;;  %v163_v55 = vld [vmem:[#allocation5 + $0x1f8] sm:$0xff]  ;;  %v158_v56 = vld [vmem:[#allocation5 + $0x1d0] sm:$0xff]  ;;  %v430_v28 = vld [vmem:[#allocation8 + $0x60] sm:$0xff] }
  0x77   :  { %821 = vmatpush1.bf16.msra.mxu0 %v820_v6  ;;  %851 = vmatprep.subr.bf16.mxu1 %v850_v50  ;;  %v854_v57 = vpack.c.bf16 %v163_v55, %v159_v54  ;;  %v162_v58 = vld [vmem:[#allocation5 + $0x1f0] sm:$0xff]  ;;  %v421_v1 = vld [vmem:[#allocation8 + $0x18] sm:$0xff]  ;;  %v513_v36 = vld [vmem:[#allocation10 + $0x8] sm:$0xff] }
  0x78   :  { %823 = vmatprep.subr.bf16.mxu0 %v822_v9  ;;  %v856_v61 = vpack.c.bf16 %v162_v58, %v158_v56  ;;  %v420_v63 = vld [vmem:[#allocation8 + $0x10] sm:$0xff]  ;;  %v425_v7 = vld [vmem:[#allocation8 + $0x38] sm:$0xff]  ;;  %v166_v9 = vlaneseq  ;;  %v516_v41 = vld [vmem:[#allocation10 + $0x20] sm:$0xff] }
  0x79   :  { %853 = vmatpush1.bf16.msra.mxu1 %v852_v53  ;;  %v886_v2 = vpack.c.bf16 %v421_v1, %v420_v63  ;;  %v424_v6 = vld [vmem:[#allocation8 + $0x30] sm:$0xff]  ;;  %v1249_v12 = vld [vmem:[%s1293_s2] sm:$0xf]  ;;  %v517_v42 = vld [vmem:[#allocation10 + $0x28] sm:$0xff] }
  0x7a   :  { %855 = vmatprep.subr.bf16.mxu1 %v854_v57  ;;  %v892_v8 = vpack.c.bf16 %v425_v7, %v424_v6  ;;  %v1243_v10 = vshrl.u32 %v166_v9, 7  ;;  %v428_v25 = vld [vmem:[#allocation8 + $0x50] sm:$0xff]  ;;  %v433_v33 = vld [vmem:[#allocation8 + $0x78] sm:$0xff]  ;;  %v913_v43 = vpack.c.bf16 %v517_v42, %v516_v41  ;;  %v521_v48 = vld [vmem:[#allocation10 + $0x48] sm:$0xff] }
  0x7b   :  { %825 = vmatpush1.bf16.msra.mxu0 %v824_v14  ;;  %v514_v37 = vld [vmem:[#allocation10 + $0x10] sm:$0xff]  ;;  %v515_v39 = vld [vmem:[#allocation10 + $0x18] sm:$0xff]  ;;  %v524_v53 = vld [vmem:[#allocation10 + $0x60] sm:$0xff] }
  0x7c   :  { %858 = vmatprep.subr.bf16.mxu0 %v1097_v20  ;;  %v168_v11 = vsub.s32 0, %v1243_v10  ;;  %v172_v13 = vsub.s32 1, %v1243_v10  ;;  %v910_v40 = vpack.c.bf16 %v515_v39, %v514_v37  ;;  %v518_v44 = vld [vmem:[#allocation10 + $0x30] sm:$0xff]  ;;  %v519_v45 = vld [vmem:[#allocation10 + $0x38] sm:$0xff]  ;;  %v525_v54 = vld [vmem:[#allocation10 + $0x68] sm:$0xff]  ;;  %v180_v57 = vsub.s32 3, %v1243_v10 }
  0x7d   :  { %857 = vmatpush1.bf16.msra.mxu1 %v856_v61  ;;  %v916_v46 = vpack.c.bf16 %v519_v45, %v518_v44  ;;  %v522_v50 = vld [vmem:[#allocation10 + $0x50] sm:$0xff]  ;;  %v523_v51 = vld [vmem:[#allocation10 + $0x58] sm:$0xff]  ;;  %v925_v55 = vpack.c.bf16 %v525_v54, %v524_v53  ;;  %v176_v59 = vsub.s32 2, %v1243_v10 }
  0x7e   :  { %251 = vmatmul.mubr.f32.vlgmr.msra.gmra.mrb[0].mxu0 %v1221_v18  ;;  %882 = vmatprep.subr.bf16.mxu1 %v1097_v20  ;;  %v169_v14 = vrot.slane %v1249_v12, %v168_v11  ;;  %v173_v15 = vrot.slane %v1249_v12, %v172_v13  ;;  %v922_v52 = vpack.c.bf16 %v523_v51, %v522_v50  ;;  %v526_v4 = vld [vmem:[#allocation10 + $0x70] sm:$0xff]  ;;  %v635_v6 = vld [vmem:[%s1296_s5] ss:$0 sm:$0xff]  ;;  %s1099_s5 = smov [#allocation11]  }
  0x7f   :  { %860 = vmatpush3.bf16.msra.mxu0 %v859_v19  ;;  %721 = vmatprep.mubr.msk.f32.mxu0 %vm1098_vm0, %v1096_v0  ;;  %v181_v60 = vrot.slane %v1249_v12, %v180_v57  ;;  %v177_v61 = vrot.slane %v1249_v12, %v176_v59  ;;  %s624_s12 = sshll.u32 %s1099_s5, 4  ;;  %s625_s12 = int_to_ptr.vmem [resolvable:$true] %s624_s12 }
  0x80   :  { %861 = vmatprep.subr.bf16.mxu0 %v1097_v20  ;;  %322 = vmatmul.mubr.f32.vlgmr.msra.gmra.mrb[0].mxu1 %v1221_v18  ;;  %s1057_s13 = scalar_lea.vmem %s625_s12, 64  ;;  %p1062_p13 = scmp.lt.s32.totalorder %s625_s12, %s625_s12 }
  0x81   :  { %884 = vmatpush3.bf16.msra.mxu1 %v883_v62  ;;  %756 = vmatprep.mubr.msk.f32.mxu1 %vm1098_vm0, %v1096_v0  ;;  %p1058_p12 = scmp.ne.s32.totalorder %s625_s12, %s1057_s13  ;;  %p1063_p0 = scmp.lt.s32.totalorder %s1057_s13, %s1057_s13 }
  0x82   :  { %885 = vmatprep.subr.bf16.mxu1 %v1097_v20 }
  0x83   :  { %863 = vmatpush3.bf16.msra.mxu0 %v862_v23  ;;  %v427_v23 = vld [vmem:[#allocation8 + $0x48] sm:$0xff]  ;;  %p1064_p1 = por %p1063_p0, %p1062_p13 }
  0x84   :  { %864 = vmatprep.subr.bf16.mxu0 %v1097_v20  ;;  %v895_v24 = vpack.c.bf16 %v427_v23, %v426_v22 }
  0x85   :  { %887 = vmatpush3.bf16.msra.mxu1 %v886_v2  ;;  %p1065_p2 = pnand %p1064_p1, %p1058_p12 }
  0x86   :  { %888 = vmatprep.subr.bf16.mxu1 %v1097_v20 }
  0x87   :  { %866 = vmatpush3.bf16.msra.mxu0 %v865_v26  ;;  %v429_v26 = vld [vmem:[#allocation8 + $0x58] sm:$0xff] }
  0x88   :  { %867 = vmatprep.subr.bf16.mxu0 %v1097_v20  ;;  %v898_v27 = vpack.c.bf16 %v429_v26, %v428_v25 }
  0x89   :  { %890 = vmatpush3.bf16.msra.mxu1 %v889_v5  ;;  %v527_v5 = vld [vmem:[#allocation10 + $0x78] sm:$0xff] }
  0x8a   :  { %891 = vmatprep.subr.bf16.mxu1 %v1097_v20 }
  0x8b   :  { %869 = vmatpush3.bf16.msra.mxu0 %v868_v29  ;;  %v431_v29 = vld [vmem:[#allocation8 + $0x68] sm:$0xff] }
  0x8c   :  { %870 = vmatprep.subr.bf16.mxu0 %v1097_v20  ;;  %v901_v31 = vpack.c.bf16 %v431_v29, %v430_v28 }
  0x8d   :  { %893 = vmatpush3.bf16.msra.mxu1 %v892_v8 }
  0x8e   :  { %894 = vmatprep.subr.bf16.mxu1 %v1097_v20 }
  0x8f   :  { %872 = vmatpush3.bf16.msra.mxu0 %v871_v32 }
  0x90   :  { %873 = vmatprep.subr.bf16.mxu0 %v1097_v20 }
  0x91   :  { %896 = vmatpush3.bf16.msra.mxu1 %v895_v24 }
  0x92   :  { %897 = vmatprep.subr.bf16.mxu1 %v1097_v20 }
  0x93   :  { %875 = vmatpush3.bf16.msra.mxu0 %v874_v35  ;;  %v512_v35 = vld [vmem:[#allocation10] sm:$0xff] }
  0x94   :  { %876 = vmatprep.subr.bf16.mxu0 %v1097_v20 }
  0x95   :  { %899 = vmatpush3.bf16.msra.mxu1 %v898_v27 }
  0x96   :  { %900 = vmatprep.subr.bf16.mxu1 %v1097_v20 }
  0x97   :  { %878 = vmatpush3.bf16.msra.mxu0 %v877_v38  ;;  %v907_v38 = vpack.c.bf16 %v513_v36, %v512_v35 }
  0x98   :  { %879 = vmatprep.subr.bf16.mxu0 %v1097_v20 }
  0x99   :  { %902 = vmatpush3.bf16.msra.mxu1 %v901_v31 }
  0x9a   :  { %903 = vmatprep.subr.bf16.mxu1 %v1097_v20 }
  0x9b   :  { %881 = vmatpush3.bf16.msra.mxu0 %v880_v47  ;;  %v520_v47 = vld [vmem:[#allocation10 + $0x40] sm:$0xff] }
  0x9c   :  { %906 = vmatprep.subr.bf16.mxu0 %v1097_v20  ;;  %v919_v49 = vpack.c.bf16 %v521_v48, %v520_v47 }
 0x151   :  { %v252_v16 = vpop.f32.mrb[0].mxu0 }
 0x152   :  { %v253_v17 = vadd.f32 %v252_v16, %v169_v14  ;;  %v254_v18 = vpop.f32.mrb[1].mxu0 }
 0x153   :  { %v255_v19 = vadd.f32 %v254_v18, %v173_v15  ;;  %v323_v30 = vpop.f32.mrb[0].mxu1  ;;  %v636_v15 = vld [vmem:[%s1298_s7] ss:$0 sm:$0xff] }
 0x154   :  { %v325_v32 = vpop.f32.mrb[1].mxu1  ;;  %v324_v1 = vadd.f32 %v323_v30, %v177_v61 }
 0x155   :  { %v328_v21 = vmul.f32 %v255_v19, %v253_v17  ;;  %v326_v62 = vadd.f32 %v325_v32, %v181_v60  ;;  %v637_v17 = vld [vmem:[%s1299_s8] ss:$0 sm:$0xff] }
 0x157   :  { %722 = vmatmul.mubr.f32.vlgmr.msra.gmra.mrb[2].mxu0 %v328_v21 }
 0x158   :  { %791 = vmatprep.mubr.msk.f32.mxu0 %vm1098_vm0, %v1096_v0  ;;  %v432_v0 = vld [vmem:[#allocation8 + $0x70] sm:$0xff]  ;;  %908 = vmatpush3.bf16.msra.mxu0 %v907_v38 }
 0x159   :  { %v904_v34 = vpack.c.bf16 %v433_v33, %v432_v0  ;;  %909 = vmatprep.subr.bf16.mxu0 %v1097_v20 }
 0x15b   :  { %905 = vmatpush3.bf16.msra.mxu1 %v904_v34 }
 0x15c   :  { %911 = vmatpush3.bf16.msra.mxu0 %v910_v40 }
 0x15d   :  { %912 = vmatprep.subr.bf16.mxu0 %v1097_v20 }
 0x160   :  { %914 = vmatpush3.bf16.msra.mxu0 %v913_v43 }
 0x161   :  { %915 = vmatprep.subr.bf16.mxu0 %v1097_v20 }
 0x164   :  { %917 = vmatpush3.bf16.msra.mxu0 %v916_v46 }
 0x165   :  { %918 = vmatprep.subr.bf16.mxu0 %v1097_v20 }
 0x168   :  { %920 = vmatpush3.bf16.msra.mxu0 %v919_v49 }
 0x169   :  { %921 = vmatprep.subr.bf16.mxu0 %v1097_v20 }
 0x16c   :  { %923 = vmatpush3.bf16.msra.mxu0 %v922_v52 }
 0x16d   :  { %924 = vmatprep.subr.bf16.mxu0 %v1097_v20 }
 0x170   :  { %926 = vmatpush3.bf16.msra.mxu0 %v925_v55 }
 0x171   :  { %927 = vmatprep.subr.bf16.mxu0 %v1097_v20  ;;  %v928_v20 = vpack.c.bf16 %v527_v5, %v526_v4 }
 0x174   :  { %929 = vmatpush3.bf16.msra.mxu0 %v928_v20 }
 0x22a   :  { %v411_v56 = vpop.f32.mrb[2].mxu0 }
 0x22b   :  { %943 = vtanh.f32 %v411_v56  ;;  %v723_v58 = vpop.f32.mrb[3].mxu0 }
 0x235   :  { %v944_v63 = vpop.eup %943 }
 0x236   :  { %v416_v2 = vmul.f32 %v944_v63, %v326_v62 }
 0x238   :  { %v417_v3 = vadd.f32 %v416_v2, %v324_v1 }
 0x23a   :  { %757 = vmatmul.mubr.f32.vlgmr.msra.gmra.mrb[2].mxu1 %v417_v3 }
 0x30d   :  { %v507_v7 = vpop.f32.mrb[2].mxu1 }
 0x30e   :  { %v508_v8 = vadd.f32 %v635_v6, %v507_v7  ;;  %v758_v9 = vpop.f32.mrb[3].mxu1 }
 0x310   :  { %v511_v10 = vmul.f32 %v508_v8, %v508_v8 }
 0x312   :  { %792 = vmatmul.mubr.f32.vlgmr.msra.gmra.mrb[4].mxu0 %v511_v10 }
 0x3e5   :  { %v594_v11 = vpop.f32.mrb[4].mxu0 }
 0x3e6   :  { %v595_v12 = vadd.f32 1e-05, %v594_v11  ;;  %v793_v13 = vpop.f32.mrb[5].mxu0 }
 0x3e8   :  { %945 = vrsqrt.f32 %v595_v12 }
 0x3f2   :  { %v946_v14 = vpop.eup %945 }
 0x3f3   :  { %v599_v16 = vmul.f32 %v946_v14, %v508_v8 }
 0x3f5   :  { %v607_v18 = vmul.f32 %v636_v15, %v599_v16 }
 0x3f7   :  { %v615_v19 = vadd.f32 %v637_v17, %v607_v18 }
 0x3f9   :  { %v616_v21 = vmax.f32 %v615_v19, 0.0 }
 0x3fb   :  { %617 = vst [vmem:[#allocation11] sm:$0xf] %v616_v21 }
 0x3fc   :  { %1068 = shalt.err (!%p1065_p2)
}
 0x3fd   :  { %s1069_s15 = scalar_lea.hbm %s1300_s9, 64 }
 0x3fe   :  { %p1070_p3 = scmp.ne.s32.totalorder %s1300_s9, %s1069_s15  ;;  %p1073_p4 = scmp.lt.u32.totalorder %s1069_s15, %s1300_s9 }
 0x400   :  { %p1075_p5 = pnand %p1073_p4, %p1070_p3 }
 0x402   :  { %1078 = shalt.err (!%p1075_p5)
}
 0x403   :  { %627 = dma.vmem_to_hbm [thread:$0]  %s625_s12, 64, %s1300_s9, [#allocation4]  }
 0x404   :  { %1085 = dma.done.wait [#allocation4], 64  }
 0x405   :  { %1086 = vsyncadd [#allocation4], 4294967232 }
 0x406   :  { %631 = vsyncpa [#allocation3], 1 }
 0x407   :  { %632 = vsyncpa [#allocation6], 1 }
 0x408   :  { %633 = vsyncpa [#allocation9], 1 }
 0x409   :  { %634 = vsyncpa [#allocation4], 1 }

</bundles_post_ra>
